<compile_context>
chip_gen: v7x
topology: tpu7x:2x2x1
jax: 0.10.0
libtpu: 0.0.40
codegen_flags: <defaults>
</compile_context>

<pallas_src>
import jax
import jax.numpy as jnp
from jax.experimental import pallas as pl
from jax.experimental.pallas import tpu as pltpu


# ----------------------------------------------------------------------------
# Fused 2-layer MLP kernel:  out = relu(relu(x @ W1t + b1) @ W2t + b2)
# Weights arrive pre-transposed (in, out) and already in compute dtype (bf16).
# Accumulation is f32 on the MXU; biases/ReLU in f32 on the VPU.
# ----------------------------------------------------------------------------
def mlp_kernel(x_ref, w1t_ref, b1_ref, w2t_ref, b2_ref, out_ref):
    x = x_ref[...].astype(w1t_ref.dtype)                       # (TB, 15) -> bf16
    h = jnp.dot(x, w1t_ref[...],
                preferred_element_type=jnp.float32) + b1_ref[...]
    h = jnp.maximum(h, 0.0)                                    # ReLU (f32)
    h = h.astype(w2t_ref.dtype)                                # bf16 for 2nd MXU pass
    o = jnp.dot(h, w2t_ref[...],
                preferred_element_type=jnp.float32) + b2_ref[...]
    out_ref[...] = jnp.maximum(o, 0.0).astype(out_ref.dtype)   # ReLU + store


# ----------------------------------------------------------------------------
# Wrapper
# ----------------------------------------------------------------------------
def clinical_mlp(x, w1, b1, w2, b2, *, row_block=2048,
                 compute_dtype=jnp.bfloat16, out_dtype=jnp.float32):
    """x: (..., input_dim). w1: (embed, input_dim), w2: (embed, embed) —
    PyTorch nn.Linear layout. Returns (..., embed_dim) in out_dtype."""
    d_in = x.shape[-1]
    d_embed = w1.shape[0]
    lead_shape = x.shape[:-1]

    # Flatten leading dims into rows; transpose + cast weights once on host.
    x2 = x.reshape(-1, d_in).astype(jnp.float32)
    n = x2.shape[0]
    w1t = jnp.asarray(w1, jnp.float32).T.astype(compute_dtype)   # (d_in, d_embed)
    w2t = jnp.asarray(w2, jnp.float32).T.astype(compute_dtype)   # (d_embed, d_embed)
    b1r = jnp.asarray(b1, jnp.float32).reshape(1, d_embed)
    b2r = jnp.asarray(b2, jnp.float32).reshape(1, d_embed)

    # Row-tile selection:
    #  * cap at 4096 (v7x 64 MiB VMEM: 2x double-buffered f32 out @4096 = 16 MiB, safe)
    #  * for n >= 8 keep at least 2 row blocks so "parallel" can use both v7x TCs
    #  * for tiny n use tb == n (block == full dim, no ragged/oversized block at all)
    row_block = min(int(row_block), 4096)
    if n < 8:
        tb = n
    else:
        half = -(-n // 2)                          # ceil(n / 2)
        tb = max(8, min(row_block, ((half + 7) // 8) * 8))
    grid = (pl.cdiv(n, tb),)                       # ragged last block: writes clipped

    out = pl.pallas_call(
        mlp_kernel,
        out_shape=jax.ShapeDtypeStruct((n, d_embed), out_dtype),
        grid=grid,
        in_specs=[
            pl.BlockSpec((tb, d_in), lambda i: (i, 0)),          # x rows (tiled)
            pl.BlockSpec((d_in, d_embed), lambda i: (0, 0)),     # W1^T (resident)
            pl.BlockSpec((1, d_embed), lambda i: (0, 0)),        # b1
            pl.BlockSpec((d_embed, d_embed), lambda i: (0, 0)),  # W2^T (resident)
            pl.BlockSpec((1, d_embed), lambda i: (0, 0)),        # b2
        ],
        out_specs=pl.BlockSpec((tb, d_embed), lambda i: (i, 0)),
        compiler_params=pltpu.CompilerParams(
            dimension_semantics=("parallel",)),
    )(x2, w1t, b1r, w2t, b2r)

    return out.reshape(lead_shape + (d_embed,))


# ----------------------------------------------------------------------------
if __name__ == "__main__":
    input_dim, embed_dim = 15, 512
    batch = 2

    key = jax.random.PRNGKey(0)
    kx, kx2, k1, kb1, k2, kb2 = jax.random.split(key, 6)

    # PyTorch nn.Linear weight layout: (out_features, in_features).
    x = jax.random.normal(kx, (batch, input_dim), jnp.float32)
    x_big = jax.random.normal(kx2, (4, 16, input_dim), jnp.float32)   # exercises grid>1
    w1 = 0.1 * jax.random.normal(k1, (embed_dim, input_dim), jnp.float32)
    b1 = 0.05 * jax.random.normal(kb1, (embed_dim,), jnp.float32)
    w2 = 0.05 * jax.random.normal(k2, (embed_dim, embed_dim), jnp.float32)
    b2 = 0.05 * jax.random.normal(kb2, (embed_dim,), jnp.float32)

    def ref_fn(xi):
        return jnp.maximum(jnp.maximum(xi @ w1.T + b1, 0.0) @ w2.T + b2, 0.0)

    out = jax.block_until_ready(clinical_mlp(x, w1, b1, w2, b2))
    out_big = jax.block_until_ready(clinical_mlp(x_big, w1, b1, w2, b2))

    assert out.shape == (batch, embed_dim), out.shape
    assert out_big.shape == (4, 16, embed_dim), out_big.shape
    assert bool(jnp.all(jnp.isfinite(out)))
    assert bool(jnp.all(jnp.isfinite(out_big)))
    # bf16 operands / f32 accumulation -> ~1e-3-level deviation from the pure-f32 ref.
    assert bool(jnp.allclose(out, ref_fn(x), rtol=5e-3, atol=5e-3))
    assert bool(jnp.allclose(out_big, ref_fn(x_big), rtol=5e-3, atol=5e-3))
    print("KERNEL_OK")
</pallas_src>

<mosaic_0001>
module attributes {stable_mosaic.version = 11 : i64} {
  func.func @mlp_kernel(%arg0: i32, %arg1: memref<2x15xf32, #tpu.memory_space<vmem>>, %arg2: memref<15x512xbf16, #tpu.memory_space<vmem>>, %arg3: memref<1x512xf32, #tpu.memory_space<vmem>>, %arg4: memref<512x512xbf16, #tpu.memory_space<vmem>>, %arg5: memref<1x512xf32, #tpu.memory_space<vmem>>, %arg6: memref<2x512xf32, #tpu.memory_space<vmem>>) attributes {dimension_semantics = [#tpu.dimension_semantics<parallel>], iteration_bounds = array<i64: 1>, scalar_prefetch = 0 : i64, scratch_operands = 0 : i64, tpu.core_type = #tpu.core_type<tc>, window_params = [{transform_indices = @transform_0, window_bounds = array<i64: 2, 15>}, {pipeline_mode = #tpu.pipeline_mode<synchronous>, transform_indices = @transform_1, window_bounds = array<i64: 15, 512>}, {pipeline_mode = #tpu.pipeline_mode<synchronous>, transform_indices = @transform_2, window_bounds = array<i64: 1, 512>}, {pipeline_mode = #tpu.pipeline_mode<synchronous>, transform_indices = @transform_3, window_bounds = array<i64: 512, 512>}, {pipeline_mode = #tpu.pipeline_mode<synchronous>, transform_indices = @transform_4, window_bounds = array<i64: 1, 512>}, {transform_indices = @transform_5, window_bounds = array<i64: 2, 512>}]} {
    %c0 = arith.constant 0 : index
    %c0_0 = arith.constant 0 : index
    %0 = vector.load %arg1[%c0, %c0_0] : memref<2x15xf32, #tpu.memory_space<vmem>>, vector<2x15xf32>
    %1 = arith.truncf %0 : vector<2x15xf32> to vector<2x15xbf16>
    %c0_1 = arith.constant 0 : index
    %c0_2 = arith.constant 0 : index
    %2 = vector.load %arg2[%c0_1, %c0_2] : memref<15x512xbf16, #tpu.memory_space<vmem>>, vector<15x512xbf16>
    %cst = arith.constant dense<0.000000e+00> : vector<2x512xf32>
    %3 = tpu.matmul %1, %2, %cst {dimension_numbers = #tpu.dot_dimension_numbers<[1], [0], [0], [1], [0, 0, 1, 1], [], []>} : vector<2x15xbf16>, vector<15x512xbf16>, vector<2x512xf32> -> vector<2x512xf32>
    %c0_3 = arith.constant 0 : index
    %c0_4 = arith.constant 0 : index
    %4 = vector.load %arg3[%c0_3, %c0_4] : memref<1x512xf32, #tpu.memory_space<vmem>>, vector<1x512xf32>
    %5 = vector.broadcast %4 : vector<1x512xf32> to vector<2x512xf32>
    %6 = arith.addf %3, %5 : vector<2x512xf32>
    %cst_5 = arith.constant 0.000000e+00 : f32
    %7 = vector.broadcast %cst_5 : f32 to vector<2x512xf32>
    %8 = arith.maximumf %6, %7 : vector<2x512xf32>
    %9 = arith.truncf %8 : vector<2x512xf32> to vector<2x512xbf16>
    %c0_6 = arith.constant 0 : index
    %c0_7 = arith.constant 0 : index
    %10 = vector.load %arg4[%c0_6, %c0_7] : memref<512x512xbf16, #tpu.memory_space<vmem>>, vector<512x512xbf16>
    %cst_8 = arith.constant dense<0.000000e+00> : vector<2x512xf32>
    %11 = tpu.matmul %9, %10, %cst_8 {dimension_numbers = #tpu.dot_dimension_numbers<[1], [0], [0], [1], [0, 0, 1, 1], [], []>} : vector<2x512xbf16>, vector<512x512xbf16>, vector<2x512xf32> -> vector<2x512xf32>
    %c0_9 = arith.constant 0 : index
    %c0_10 = arith.constant 0 : index
    %12 = vector.load %arg5[%c0_9, %c0_10] : memref<1x512xf32, #tpu.memory_space<vmem>>, vector<1x512xf32>
    %13 = vector.broadcast %12 : vector<1x512xf32> to vector<2x512xf32>
    %14 = arith.addf %11, %13 : vector<2x512xf32>
    %cst_11 = arith.constant 0.000000e+00 : f32
    %15 = vector.broadcast %cst_11 : f32 to vector<2x512xf32>
    %16 = arith.maximumf %14, %15 : vector<2x512xf32>
    %c0_12 = arith.constant 0 : index
    %c0_13 = arith.constant 0 : index
    %17 = vector.load %arg6[%c0_12, %c0_13] : memref<2x512xf32, #tpu.memory_space<vmem>>, vector<2x512xf32>
    tpu.vector_store %arg6[%c0_12, %c0_13], %16 {strides = array<i32>} : memref<2x512xf32, #tpu.memory_space<vmem>>, vector<2x512xf32>,
    return
  }
  func.func @transform_0(%arg0: i32) -> (i32, i32) {
    %c0_i32 = arith.constant 0 : i32
    %c0_i32_0 = arith.constant 0 : i32
    return %arg0, %c0_i32 : i32, i32
  }
  func.func @transform_1(%arg0: i32) -> (i32, i32) {
    %c0_i32 = arith.constant 0 : i32
    %c0_i32_0 = arith.constant 0 : i32
    %c0_i32_1 = arith.constant 0 : i32
    return %c0_i32, %c0_i32_0 : i32, i32
  }
  func.func @transform_2(%arg0: i32) -> (i32, i32) {
    %c0_i32 = arith.constant 0 : i32
    %c0_i32_0 = arith.constant 0 : i32
    %c0_i32_1 = arith.constant 0 : i32
    return %c0_i32, %c0_i32_0 : i32, i32
  }
  func.func @transform_3(%arg0: i32) -> (i32, i32) {
    %c0_i32 = arith.constant 0 : i32
    %c0_i32_0 = arith.constant 0 : i32
    %c0_i32_1 = arith.constant 0 : i32
    return %c0_i32, %c0_i32_0 : i32, i32
  }
  func.func @transform_4(%arg0: i32) -> (i32, i32) {
    %c0_i32 = arith.constant 0 : i32
    %c0_i32_0 = arith.constant 0 : i32
    %c0_i32_1 = arith.constant 0 : i32
    return %c0_i32, %c0_i32_0 : i32, i32
  }
  func.func @transform_5(%arg0: i32) -> (i32, i32) {
    %c0_i32 = arith.constant 0 : i32
    %c0_i32_0 = arith.constant 0 : i32
    return %arg0, %c0_i32 : i32, i32
  }
}

</mosaic_0001>

<bundles_post_ra>
// kernel: tpu_custom_call.1
= control target key start
LH: loop header
LB: loop body
LE: loop exit
PB: predicated region body
PF: predicated region fallthrough
CT: control target
= control target key end

     0   :  { %10 = vsyncpa [#allocation3], 0  ;;  %s1786_s0 = inlined_call_operand.hbm [shape: f32[2,15], index: 0, kind: input, shape index: {}]   ;;  %s1787_s1 = inlined_call_operand.hbm [shape: bf16[15,512], index: 1, kind: input, shape index: {}]   ;;  %s1788_s2 = inlined_call_operand.vmem [shape: f32[1,512], index: 2, kind: input, shape index: {}]   ;;  %s1789_s3 = inlined_call_operand.hbm [shape: bf16[512,512], index: 3, kind: input, shape index: {}]   ;;  %s1790_s4 = inlined_call_operand.vmem [shape: f32[1,512], index: 4, kind: input, shape index: {}]   ;;  %s1791_s5 = inlined_call_operand.hbm [shape: f32[2,512], index: 5, kind: output, shape index: {}]  }
   0x1   :  { %11 = vsyncpa [#allocation6], 0 }
   0x2   :  { %12 = vsyncpa [#allocation4], 0  ;;  %s1659_s18 = smov [#allocation5]   ;;  %s1565_s22 = scalar_lea.hbm %s1787_s1, 512 }
   0x3   :  { %s28_s19 = sshll.u32 %s1659_s18, 4  ;;  %p1566_p0 = scmp.ne.s32.totalorder %s1787_s1, %s1565_s22  ;;  %s29_s19 = int_to_ptr.vmem [resolvable:$true] %s28_s19 }
   0x4   :  { %p1569_p1 = scmp.lt.u32.totalorder %s1565_s22, %s1787_s1 }
   0x6   :  { %p1571_p2 = pnand %p1569_p1, %p1566_p0 }
   0x8   :  { %1574 = shalt.err (!%p1571_p2)
}
   0x9   :  { %s1575_s27 = scalar_lea.vmem %s29_s19, 512  ;;  %p1580_p4 = scmp.lt.s32.totalorder %s29_s19, %s29_s19 }
   0xa   :  { %p1576_p3 = scmp.ne.s32.totalorder %s29_s19, %s1575_s27  ;;  %p1581_p5 = scmp.lt.s32.totalorder %s1575_s27, %s1575_s27 }
   0xc   :  { %p1582_p6 = por %p1581_p5, %p1580_p4 }
   0xe   :  { %p1583_p7 = pnand %p1582_p6, %p1576_p3 }
  0x10   :  { %1586 = shalt.err (!%p1583_p7)
}
  0x11   :  { %s1660_s28 = smov 256   ;;  %s1661_s29 = smov 16  }
  0x12   :  { %34 = dma.hbm_to_vmem [thread:$0]  %s1787_s1, 512, %s29_s19, [#allocation6], %s1660_s28, %s1660_s28, %s1661_s29  }
  0x13   :  { %s1662_s7 = smov [#allocation2]   ;;  %s1663_s9 = smov [#allocation7]  }
  0x14   :  { %s19_s8 = sshll.u32 %s1662_s7, 4  ;;  %s42_s10 = sshll.u32 %s1663_s9, 4  ;;  %s20_s8 = int_to_ptr.vmem [resolvable:$true] %s19_s8  ;;  %s43_s10 = int_to_ptr.vmem [resolvable:$true] %s42_s10 }
  0x15   :  { %s1587_s13 = scalar_lea.hbm %s1786_s0, 32 }
  0x16   :  { %p1588_p8 = scmp.ne.s32.totalorder %s1786_s0, %s1587_s13  ;;  %p1591_p9 = scmp.lt.u32.totalorder %s1587_s13, %s1786_s0 }
  0x18   :  { %p1593_p10 = pnand %p1591_p9, %p1588_p8 }
  0x1a   :  { %1596 = shalt.err (!%p1593_p10)
}
  0x1b   :  { %s1597_s1 = scalar_lea.vmem %s20_s8, 32  ;;  %p1602_p12 = scmp.lt.s32.totalorder %s20_s8, %s20_s8 }
  0x1c   :  { %p1598_p11 = scmp.ne.s32.totalorder %s20_s8, %s1597_s1  ;;  %p1603_p13 = scmp.lt.s32.totalorder %s1597_s1, %s1597_s1 }
  0x1e   :  { %p1604_p0 = por %p1603_p13, %p1602_p12 }
  0x20   :  { %p1605_p1 = pnand %p1604_p0, %p1598_p11 }
  0x22   :  { %1608 = shalt.err (!%p1605_p1)
}
  0x23   :  { %22 = dma.hbm_to_vmem [thread:$0]  %s1786_s0, 32, %s20_s8, [#allocation3]  }
  0x24   :  { %s1609_s22 = scalar_lea.hbm %s1789_s3, 16384 }
  0x25   :  { %p1610_p2 = scmp.ne.s32.totalorder %s1789_s3, %s1609_s22  ;;  %p1613_p3 = scmp.lt.u32.totalorder %s1609_s22, %s1789_s3 }
  0x27   :  { %p1615_p4 = pnand %p1613_p3, %p1610_p2 }
  0x29   :  { %1618 = shalt.err (!%p1615_p4)
}
  0x2a   :  { %s1619_s27 = scalar_lea.vmem %s43_s10, 16384  ;;  %p1624_p6 = scmp.lt.s32.totalorder %s43_s10, %s43_s10 }
  0x2b   :  { %p1620_p5 = scmp.ne.s32.totalorder %s43_s10, %s1619_s27  ;;  %p1625_p7 = scmp.lt.s32.totalorder %s1619_s27, %s1619_s27 }
  0x2d   :  { %p1626_p8 = por %p1625_p7, %p1624_p6 }
  0x2f   :  { %p1627_p9 = pnand %p1626_p8, %p1620_p5 }
  0x31   :  { %1630 = shalt.err (!%p1627_p9)
}
  0x32   :  { %48 = dma.hbm_to_vmem [thread:$0]  %s1789_s3, 16384, %s43_s10, [#allocation6], %s1660_s28, %s1660_s28, %s1661_s29  }
  0x33   :  { %1653 = dma.done.wait [#allocation3], 32  }
  0x34   :  { %1654 = vsyncadd [#allocation3], 4294967264 }
  0x35   :  { %1655 = dma.done.wait [#allocation6], 16896  }
  0x36   :  { %1656 = vsyncadd [#allocation6], 4294950400  ;;  %vm109_vm0 = vcmask 1046528   ;;  %v1664_v0 = vmov 0   ;;  %vm110_vm1 = vcmask 1047552   ;;  %v1665_v1 = vmov 65535  }
  0x37   :  { %157 = vmatprep.mubr.bf16.mxu0 %v1664_v0  ;;  %198 = vmatprep.mubr.bf16.mxu1 %v1664_v0  ;;  %v111_v2 = vsel %vm109_vm0, 4294967295, %v1665_v1  ;;  %v1367_v4 = vld [vmem:[#allocation5 + $0x4] ss:$16 sps:$4 sm:$0xff]   ;;  %v1369_v5 = vld [vmem:[#allocation5] ss:$16 sps:$4 sm:$0xff]   ;;  %vm105_vm2 = vcmask 121856  }
  0x38   :  { %v112_v3 = vsel %vm110_vm1, %v111_v2, 0  ;;  %v61_v6 = vld [vmem:[#allocation2] sm:$0x3]  ;;  %v1372_v9 = vld [vmem:[#allocation5 + $0x8] ss:$16 sps:$4 sm:$0xff]  }
  0x39   :  { %v117_v7 = vand.u32 %v1367_v4, %v112_v3  ;;  %v1370_v8 = vld [vmem:[#allocation5 + $0xc] ss:$16 sps:$4 sm:$0xff]   ;;  %v114_v10 = vand.u32 %v1369_v5, %v112_v3  ;;  %v62_v11 = vpack.c.bf16 %v61_v6, %v61_v6  ;;  %v120_v13 = vand.u32 %v1372_v9, %v112_v3  ;;  %v1375_v14 = vld [vmem:[#allocation7 + $0x4] ss:$16 sps:$4 sm:$0xff]   ;;  %v1373_v15 = vld [vmem:[#allocation7] ss:$16 sps:$4 sm:$0xff]  }
  0x3a   :  { %v123_v12 = vand.u32 %v1370_v8, %v112_v3  ;;  %v1378_v16 = vld [vmem:[#allocation7 + $0xc] ss:$16 sps:$4 sm:$0xff]   ;;  %v1381_v17 = vld [vmem:[#allocation7 + $0x24] ss:$16 sps:$4 sm:$0xff]   ;;  %v1376_v18 = vld [vmem:[#allocation7 + $0x8] ss:$16 sps:$4 sm:$0xff]  }
  0x3b   :  { %125 = vmatprep.subr.bf16.mxu0 %v117_v7  ;;  %v1384_v19 = vld [vmem:[#allocation7 + $0x2c] ss:$16 sps:$4 sm:$0xff]   ;;  %v1379_v20 = vld [vmem:[#allocation7 + $0x20] ss:$16 sps:$4 sm:$0xff]   ;;  %v1387_v21 = vld [vmem:[#allocation7 + $0x44] ss:$16 sps:$4 sm:$0xff]  }
  0x3c   :  { %126 = vmatpush1.bf16.msra.mxu0 %v114_v10  ;;  %166 = vmatprep.subr.bf16.mxu1 %v123_v12  ;;  %v1382_v22 = vld [vmem:[#allocation7 + $0x28] ss:$16 sps:$4 sm:$0xff]   ;;  %v1390_v23 = vld [vmem:[#allocation7 + $0x4c] ss:$16 sps:$4 sm:$0xff]   ;;  %v1385_v24 = vld [vmem:[#allocation7 + $0x40] ss:$16 sps:$4 sm:$0xff]  }
  0x3d   :  { %1005 = vmatprep.subr.bf16.mxu0 %v1375_v14  ;;  %167 = vmatpush1.bf16.msra.mxu1 %v120_v13  ;;  %v1393_v25 = vld [vmem:[#allocation7 + $0x64] ss:$16 sps:$4 sm:$0xff]   ;;  %v1388_v26 = vld [vmem:[#allocation7 + $0x48] ss:$16 sps:$4 sm:$0xff]   ;;  %v1396_v27 = vld [vmem:[#allocation7 + $0x6c] ss:$16 sps:$4 sm:$0xff]  }
  0x3e   :  { %1087 = vmatprep.subr.bf16.mxu1 %v1378_v16  ;;  %v1391_v28 = vld [vmem:[#allocation7 + $0x60] ss:$16 sps:$4 sm:$0xff]   ;;  %v1399_v29 = vld [vmem:[#allocation7 + $0x84] ss:$16 sps:$4 sm:$0xff]   ;;  %v1394_v30 = vld [vmem:[#allocation7 + $0x68] ss:$16 sps:$4 sm:$0xff]   ;;  %v69_v16 = vlaneseq }
  0x3f   :  { %1216 = vmatmul.mubr.msk.bf16.vlgmr.msra.gmra.mrb[0].mxu0 %vm105_vm2, %v62_v11  ;;  %v1402_v31 = vld [vmem:[#allocation7 + $0x8c] ss:$16 sps:$4 sm:$0xff]   ;;  %v1397_v32 = vld [vmem:[#allocation7 + $0x80] ss:$16 sps:$4 sm:$0xff]   ;;  %v1405_v33 = vld [vmem:[#allocation7 + $0xa4] ss:$16 sps:$4 sm:$0xff]  }
  0x40   :  { %1006 = vmatpush1.bf16.msra.mxu0 %v1373_v15  ;;  %1217 = vmatmul.mubr.msk.bf16.vlgmr.msra.gmra.mrb[0].mxu1 %vm105_vm2, %v62_v11  ;;  %v1400_v34 = vld [vmem:[#allocation7 + $0x88] ss:$16 sps:$4 sm:$0xff]   ;;  %v1408_v35 = vld [vmem:[#allocation7 + $0xac] ss:$16 sps:$4 sm:$0xff]   ;;  %v1403_v36 = vld [vmem:[#allocation7 + $0xa0] ss:$16 sps:$4 sm:$0xff]  }
  0x41   :  { %1007 = vmatprep.subr.bf16.mxu0 %v1381_v17  ;;  %1088 = vmatpush1.bf16.msra.mxu1 %v1376_v18  ;;  %v1411_v37 = vld [vmem:[#allocation7 + $0xc4] ss:$16 sps:$4 sm:$0xff]   ;;  %v1406_v38 = vld [vmem:[#allocation7 + $0xa8] ss:$16 sps:$4 sm:$0xff]   ;;  %v1414_v39 = vld [vmem:[#allocation7 + $0xcc] ss:$16 sps:$4 sm:$0xff]  }
  0x42   :  { %1089 = vmatprep.subr.bf16.mxu1 %v1384_v19  ;;  %v1409_v40 = vld [vmem:[#allocation7 + $0xc0] ss:$16 sps:$4 sm:$0xff]   ;;  %v1417_v41 = vld [vmem:[#allocation7 + $0xe4] ss:$16 sps:$4 sm:$0xff]   ;;  %v1412_v42 = vld [vmem:[#allocation7 + $0xc8] ss:$16 sps:$4 sm:$0xff]  }
  0x43   :  { %v1420_v43 = vld [vmem:[#allocation7 + $0xec] ss:$16 sps:$4 sm:$0xff]   ;;  %v1415_v44 = vld [vmem:[#allocation7 + $0xe0] ss:$16 sps:$4 sm:$0xff]   ;;  %v1423_v45 = vld [vmem:[#allocation7 + $0x104] ss:$16 sps:$4 sm:$0xff]  }
  0x44   :  { %1008 = vmatpush1.bf16.msra.mxu0 %v1379_v20  ;;  %v1418_v46 = vld [vmem:[#allocation7 + $0xe8] ss:$16 sps:$4 sm:$0xff]   ;;  %v1426_v47 = vld [vmem:[#allocation7 + $0x10c] ss:$16 sps:$4 sm:$0xff]   ;;  %v1421_v48 = vld [vmem:[#allocation7 + $0x100] ss:$16 sps:$4 sm:$0xff]  }
  0x45   :  { %1009 = vmatprep.subr.bf16.mxu0 %v1387_v21  ;;  %1090 = vmatpush1.bf16.msra.mxu1 %v1382_v22  ;;  %v1424_v49 = vld [vmem:[#allocation7 + $0x108] ss:$16 sps:$4 sm:$0xff]   ;;  %v1429_v50 = vld [vmem:[#allocation7 + $0x124] ss:$16 sps:$4 sm:$0xff]   ;;  %v1427_v51 = vld [vmem:[#allocation7 + $0x120] ss:$16 sps:$4 sm:$0xff]  }
  0x46   :  { %1091 = vmatprep.subr.bf16.mxu1 %v1390_v23  ;;  %v1432_v52 = vld [vmem:[#allocation7 + $0x12c] ss:$16 sps:$4 sm:$0xff]   ;;  %v1435_v53 = vld [vmem:[#allocation7 + $0x144] ss:$16 sps:$4 sm:$0xff]   ;;  %v1430_v54 = vld [vmem:[#allocation7 + $0x128] ss:$16 sps:$4 sm:$0xff]  }
  0x47   :  { %v1438_v55 = vld [vmem:[#allocation7 + $0x14c] ss:$16 sps:$4 sm:$0xff]   ;;  %v1433_v56 = vld [vmem:[#allocation7 + $0x140] ss:$16 sps:$4 sm:$0xff]   ;;  %v1441_v57 = vld [vmem:[#allocation7 + $0x164] ss:$16 sps:$4 sm:$0xff]  }
  0x48   :  { %1010 = vmatpush1.bf16.msra.mxu0 %v1385_v24  ;;  %v1436_v58 = vld [vmem:[#allocation7 + $0x148] ss:$16 sps:$4 sm:$0xff]   ;;  %v1444_v59 = vld [vmem:[#allocation7 + $0x16c] ss:$16 sps:$4 sm:$0xff]   ;;  %v1439_v60 = vld [vmem:[#allocation7 + $0x160] ss:$16 sps:$4 sm:$0xff]  }
  0x49   :  { %1011 = vmatprep.subr.bf16.mxu0 %v1393_v25  ;;  %1092 = vmatpush1.bf16.msra.mxu1 %v1388_v26  ;;  %v1447_v61 = vld [vmem:[#allocation7 + $0x184] ss:$16 sps:$4 sm:$0xff]   ;;  %v1442_v62 = vld [vmem:[#allocation7 + $0x168] ss:$16 sps:$4 sm:$0xff]   ;;  %v1450_v63 = vld [vmem:[#allocation7 + $0x18c] ss:$16 sps:$4 sm:$0xff]  }
  0x4a   :  { %1093 = vmatprep.subr.bf16.mxu1 %v1396_v27  ;;  %v1445_v0 = vld [vmem:[#allocation7 + $0x180] ss:$16 sps:$4 sm:$0xff]   ;;  %v1453_v1 = vld [vmem:[#allocation7 + $0x1a4] ss:$16 sps:$4 sm:$0xff]   ;;  %v1448_v2 = vld [vmem:[#allocation7 + $0x188] ss:$16 sps:$4 sm:$0xff]  }
  0x4b   :  { %v1456_v3 = vld [vmem:[#allocation7 + $0x1ac] ss:$16 sps:$4 sm:$0xff]   ;;  %v1451_v4 = vld [vmem:[#allocation7 + $0x1a0] ss:$16 sps:$4 sm:$0xff]   ;;  %v1454_v5 = vld [vmem:[#allocation7 + $0x1a8] ss:$16 sps:$4 sm:$0xff]  }
  0x4c   :  { %1012 = vmatpush1.bf16.msra.mxu0 %v1391_v28  ;;  %v1459_v6 = vld [vmem:[#allocation7 + $0x1c4] ss:$16 sps:$4 sm:$0xff]   ;;  %v1462_v7 = vld [vmem:[#allocation7 + $0x1cc] ss:$16 sps:$4 sm:$0xff]   ;;  %v1457_v8 = vld [vmem:[#allocation7 + $0x1c0] ss:$16 sps:$4 sm:$0xff]  }
  0x4d   :  { %1013 = vmatprep.subr.bf16.mxu0 %v1399_v29  ;;  %1094 = vmatpush1.bf16.msra.mxu1 %v1394_v30  ;;  %v1460_v9 = vld [vmem:[#allocation7 + $0x1c8] ss:$16 sps:$4 sm:$0xff]   ;;  %v1465_v10 = vld [vmem:[#allocation7 + $0x1e4] ss:$16 sps:$4 sm:$0xff]   ;;  %v1468_v11 = vld [vmem:[#allocation7 + $0x1ec] ss:$16 sps:$4 sm:$0xff]  }
  0x4e   :  { %1095 = vmatprep.subr.bf16.mxu1 %v1402_v31  ;;  %v1463_v12 = vld [vmem:[#allocation7 + $0x1e0] ss:$16 sps:$4 sm:$0xff]   ;;  %v1466_v13 = vld [vmem:[#allocation7 + $0x1e8] ss:$16 sps:$4 sm:$0xff]   ;;  %v1471_v14 = vld [vmem:[#allocation7 + $0x204] ss:$16 sps:$4 sm:$0xff]  }
  0x4f   :  { %v1474_v15 = vld [vmem:[#allocation7 + $0x20c] ss:$16 sps:$4 sm:$0xff]   ;;  %v1740_v17 = vshrl.u32 %v69_v16, 7  ;;  %v1531_v16 = vld [vmem:[#allocation7 + $0x344] ss:$16 sps:$4 sm:$0xff]  }
  0x50   :  { %1014 = vmatpush1.bf16.msra.mxu0 %v1397_v32  ;;  %v1746_v19 = vld [vmem:[%s1788_s2] sm:$0xf] }
  0x51   :  { %1015 = vmatprep.subr.bf16.mxu0 %v1405_v33  ;;  %1096 = vmatpush1.bf16.msra.mxu1 %v1400_v34  ;;  %v71_v18 = vsub.s32 0, %v1740_v17  ;;  %v75_v20 = vsub.s32 1, %v1740_v17  ;;  %v83_v21 = vsub.s32 3, %v1740_v17 }
  0x52   :  { %1097 = vmatprep.subr.bf16.mxu1 %v1408_v35 }
  0x53   :  { %v72_v22 = vrot.slane %v1746_v19, %v71_v18  ;;  %v76_v23 = vrot.slane %v1746_v19, %v75_v20  ;;  %v84_v25 = vrot.slane %v1746_v19, %v83_v21 }
  0x54   :  { %1016 = vmatpush1.bf16.msra.mxu0 %v1403_v36 }
  0x55   :  { %1017 = vmatprep.subr.bf16.mxu0 %v1411_v37  ;;  %1098 = vmatpush1.bf16.msra.mxu1 %v1406_v38 }
  0x56   :  { %1099 = vmatprep.subr.bf16.mxu1 %v1414_v39  ;;  %v1469_v39 = vld [vmem:[#allocation7 + $0x200] ss:$16 sps:$4 sm:$0xff]  }
  0x58   :  { %1018 = vmatpush1.bf16.msra.mxu0 %v1409_v40  ;;  %v1472_v40 = vld [vmem:[#allocation7 + $0x208] ss:$16 sps:$4 sm:$0xff]  }
  0x59   :  { %1019 = vmatprep.subr.bf16.mxu0 %v1417_v41  ;;  %1100 = vmatpush1.bf16.msra.mxu1 %v1412_v42 }
  0x5a   :  { %1101 = vmatprep.subr.bf16.mxu1 %v1420_v43  ;;  %v1477_v43 = vld [vmem:[#allocation7 + $0x224] ss:$16 sps:$4 sm:$0xff]  }
  0x5c   :  { %1020 = vmatpush1.bf16.msra.mxu0 %v1415_v44  ;;  %v1480_v44 = vld [vmem:[#allocation7 + $0x22c] ss:$16 sps:$4 sm:$0xff]  }
  0x5d   :  { %1021 = vmatprep.subr.bf16.mxu0 %v1423_v45  ;;  %1102 = vmatpush1.bf16.msra.mxu1 %v1418_v46  ;;  %v1475_v46 = vld [vmem:[#allocation7 + $0x220] ss:$16 sps:$4 sm:$0xff]  }
  0x5e   :  { %1103 = vmatprep.subr.bf16.mxu1 %v1426_v47  ;;  %v1478_v47 = vld [vmem:[#allocation7 + $0x228] ss:$16 sps:$4 sm:$0xff]  }
  0x60   :  { %1022 = vmatpush1.bf16.msra.mxu0 %v1421_v48  ;;  %v1483_v48 = vld [vmem:[#allocation7 + $0x244] ss:$16 sps:$4 sm:$0xff]  }
  0x61   :  { %1023 = vmatprep.subr.bf16.mxu0 %v1429_v50  ;;  %1104 = vmatpush1.bf16.msra.mxu1 %v1424_v49  ;;  %v1486_v49 = vld [vmem:[#allocation7 + $0x24c] ss:$16 sps:$4 sm:$0xff]   ;;  %v1481_v50 = vld [vmem:[#allocation7 + $0x240] ss:$16 sps:$4 sm:$0xff]  }
  0x62   :  { %1105 = vmatprep.subr.bf16.mxu1 %v1432_v52  ;;  %v1489_v52 = vld [vmem:[#allocation7 + $0x264] ss:$16 sps:$4 sm:$0xff]  }
  0x64   :  { %1024 = vmatpush1.bf16.msra.mxu0 %v1427_v51  ;;  %v1484_v51 = vld [vmem:[#allocation7 + $0x248] ss:$16 sps:$4 sm:$0xff]  }
  0x65   :  { %1025 = vmatprep.subr.bf16.mxu0 %v1435_v53  ;;  %1106 = vmatpush1.bf16.msra.mxu1 %v1430_v54  ;;  %v1492_v53 = vld [vmem:[#allocation7 + $0x26c] ss:$16 sps:$4 sm:$0xff]   ;;  %v1487_v54 = vld [vmem:[#allocation7 + $0x260] ss:$16 sps:$4 sm:$0xff]  }
  0x66   :  { %1107 = vmatprep.subr.bf16.mxu1 %v1438_v55  ;;  %v1490_v55 = vld [vmem:[#allocation7 + $0x268] ss:$16 sps:$4 sm:$0xff]  }
  0x68   :  { %1026 = vmatpush1.bf16.msra.mxu0 %v1433_v56  ;;  %v1495_v56 = vld [vmem:[#allocation7 + $0x284] ss:$16 sps:$4 sm:$0xff]  }
  0x69   :  { %1027 = vmatprep.subr.bf16.mxu0 %v1441_v57  ;;  %1108 = vmatpush1.bf16.msra.mxu1 %v1436_v58  ;;  %v1498_v57 = vld [vmem:[#allocation7 + $0x28c] ss:$16 sps:$4 sm:$0xff]   ;;  %v1493_v58 = vld [vmem:[#allocation7 + $0x280] ss:$16 sps:$4 sm:$0xff]  }
  0x6a   :  { %1109 = vmatprep.subr.bf16.mxu1 %v1444_v59  ;;  %v1496_v59 = vld [vmem:[#allocation7 + $0x288] ss:$16 sps:$4 sm:$0xff]  }
  0x6c   :  { %1028 = vmatpush1.bf16.msra.mxu0 %v1439_v60  ;;  %v1501_v60 = vld [vmem:[#allocation7 + $0x2a4] ss:$16 sps:$4 sm:$0xff]  }
  0x6d   :  { %1029 = vmatprep.subr.bf16.mxu0 %v1447_v61  ;;  %1110 = vmatpush1.bf16.msra.mxu1 %v1442_v62  ;;  %v1504_v61 = vld [vmem:[#allocation7 + $0x2ac] ss:$16 sps:$4 sm:$0xff]   ;;  %v1499_v62 = vld [vmem:[#allocation7 + $0x2a0] ss:$16 sps:$4 sm:$0xff]  }
  0x6e   :  { %1111 = vmatprep.subr.bf16.mxu1 %v1450_v63  ;;  %v1502_v63 = vld [vmem:[#allocation7 + $0x2a8] ss:$16 sps:$4 sm:$0xff]  }
  0x70   :  { %1030 = vmatpush1.bf16.msra.mxu0 %v1445_v0  ;;  %v1507_v0 = vld [vmem:[#allocation7 + $0x2c4] ss:$16 sps:$4 sm:$0xff]  }
  0x71   :  { %1031 = vmatprep.subr.bf16.mxu0 %v1453_v1  ;;  %1112 = vmatpush1.bf16.msra.mxu1 %v1448_v2  ;;  %v1510_v1 = vld [vmem:[#allocation7 + $0x2cc] ss:$16 sps:$4 sm:$0xff]   ;;  %v1505_v2 = vld [vmem:[#allocation7 + $0x2c0] ss:$16 sps:$4 sm:$0xff]  }
  0x72   :  { %1113 = vmatprep.subr.bf16.mxu1 %v1456_v3  ;;  %v1508_v3 = vld [vmem:[#allocation7 + $0x2c8] ss:$16 sps:$4 sm:$0xff]  }
  0x74   :  { %1032 = vmatpush1.bf16.msra.mxu0 %v1451_v4  ;;  %v1513_v4 = vld [vmem:[#allocation7 + $0x2e4] ss:$16 sps:$4 sm:$0xff]  }
  0x75   :  { %1114 = vmatpush1.bf16.msra.mxu1 %v1454_v5  ;;  %1033 = vmatprep.subr.bf16.mxu0 %v1459_v6  ;;  %v1516_v5 = vld [vmem:[#allocation7 + $0x2ec] ss:$16 sps:$4 sm:$0xff]   ;;  %v1511_v6 = vld [vmem:[#allocation7 + $0x2e0] ss:$16 sps:$4 sm:$0xff]  }
  0x76   :  { %1115 = vmatprep.subr.bf16.mxu1 %v1462_v7  ;;  %v1514_v7 = vld [vmem:[#allocation7 + $0x2e8] ss:$16 sps:$4 sm:$0xff]  }
  0x78   :  { %1034 = vmatpush1.bf16.msra.mxu0 %v1457_v8  ;;  %v1519_v8 = vld [vmem:[#allocation7 + $0x304] ss:$16 sps:$4 sm:$0xff]  }
  0x79   :  { %1116 = vmatpush1.bf16.msra.mxu1 %v1460_v9  ;;  %1035 = vmatprep.subr.bf16.mxu0 %v1465_v10  ;;  %v1522_v9 = vld [vmem:[#allocation7 + $0x30c] ss:$16 sps:$4 sm:$0xff]   ;;  %v1517_v10 = vld [vmem:[#allocation7 + $0x300] ss:$16 sps:$4 sm:$0xff]  }
  0x7a   :  { %1117 = vmatprep.subr.bf16.mxu1 %v1468_v11  ;;  %v1520_v11 = vld [vmem:[#allocation7 + $0x308] ss:$16 sps:$4 sm:$0xff]  }
  0x7c   :  { %1036 = vmatpush1.bf16.msra.mxu0 %v1463_v12  ;;  %v1525_v12 = vld [vmem:[#allocation7 + $0x324] ss:$16 sps:$4 sm:$0xff]  }
  0x7d   :  { %1118 = vmatpush1.bf16.msra.mxu1 %v1466_v13  ;;  %1046 = vmatprep.subr.bf16.mxu0 %v1471_v14  ;;  %v1528_v13 = vld [vmem:[#allocation7 + $0x32c] ss:$16 sps:$4 sm:$0xff]   ;;  %v1523_v14 = vld [vmem:[#allocation7 + $0x320] ss:$16 sps:$4 sm:$0xff]  }
  0x7e   :  { %1128 = vmatprep.subr.bf16.mxu1 %v1474_v15  ;;  %v1526_v15 = vld [vmem:[#allocation7 + $0x328] ss:$16 sps:$4 sm:$0xff]  }
 0x112   :  { %v159_v24 = vpop.f32.mrb[0].mxu0 }
 0x113   :  { %v160_v26 = vadd.f32 %v159_v24, %v72_v22  ;;  %v161_v27 = vpop.f32.mrb[1].mxu0  ;;  %v1759_v30 = vpop.f32.mrb[0].mxu1  ;;  %v1534_v22 = vld [vmem:[#allocation7 + $0x34c] ss:$16 sps:$4 sm:$0xff]   ;;  %v1532_v24 = vld [vmem:[#allocation7 + $0x348] ss:$16 sps:$4 sm:$0xff]  }
 0x114   :  { %v162_v28 = vadd.f32 %v161_v27, %v76_v23  ;;  %v163_v29 = vpop.f32.mrb[2].mxu0  ;;  %v202_v33 = vpop.f32.mrb[1].mxu1  ;;  %v1529_v23 = vld [vmem:[#allocation7 + $0x340] ss:$16 sps:$4 sm:$0xff]  }
 0x115   :  { %v207_v31 = vmax.f32 %v160_v26, 0.0  ;;  %v164_v32 = vpop.f32.mrb[3].mxu0  ;;  %v203_v35 = vadd.f32 %v202_v33, %v84_v25  ;;  %v204_v36 = vpop.f32.mrb[2].mxu1  ;;  %v1537_v25 = vld [vmem:[#allocation7 + $0x364] ss:$16 sps:$4 sm:$0xff]  }
 0x116   :  { %v208_v34 = vmax.f32 %v162_v28, 0.0  ;;  %v205_v37 = vpop.f32.mrb[3].mxu1  ;;  %v1540_v26 = vld [vmem:[#allocation7 + $0x36c] ss:$16 sps:$4 sm:$0xff]   ;;  %v1535_v27 = vld [vmem:[#allocation7 + $0x360] ss:$16 sps:$4 sm:$0xff]  }
 0x117   :  { %v210_v41 = vmax.f32 %v203_v35, 0.0  ;;  %v211_v42 = vpack.c.bf16 %v207_v31, %v207_v31  ;;  %v1538_v28 = vld [vmem:[#allocation7 + $0x368] ss:$16 sps:$4 sm:$0xff]   ;;  %v1543_v29 = vld [vmem:[#allocation7 + $0x384] ss:$16 sps:$4 sm:$0xff]  }
 0x118   :  { %v212_v38 = vpack.c.bf16 %v208_v34, %v208_v34  ;;  %v1546_v31 = vld [vmem:[#allocation7 + $0x38c] ss:$16 sps:$4 sm:$0xff]   ;;  %v1541_v32 = vld [vmem:[#allocation7 + $0x380] ss:$16 sps:$4 sm:$0xff]   ;;  %v1544_v33 = vld [vmem:[#allocation7 + $0x388] ss:$16 sps:$4 sm:$0xff]  }
 0x119   :  { %v214_v45 = vpack.c.bf16 %v210_v41, %v210_v41  ;;  %v79_v34 = vsub.s32 2, %v1740_v17  ;;  %v1549_v35 = vld [vmem:[#allocation7 + $0x3a4] ss:$16 sps:$4 sm:$0xff]   ;;  %v1552_v36 = vld [vmem:[#allocation7 + $0x3ac] ss:$16 sps:$4 sm:$0xff]  }
 0x11a   :  { %1037 = vmatprep.mubr.bf16.mxu0 %v212_v38  ;;  %1119 = vmatprep.mubr.bf16.mxu1 %v212_v38  ;;  %v1547_v37 = vld [vmem:[#allocation7 + $0x3a0] ss:$16 sps:$4 sm:$0xff]   ;;  %v1550_v38 = vld [vmem:[#allocation7 + $0x3a8] ss:$16 sps:$4 sm:$0xff]   ;;  %v1558_v41 = vld [vmem:[#allocation7 + $0x3cc] ss:$16 sps:$4 sm:$0xff]  }
 0x11b   :  { %1038 = vmatmul.mubr.bf16.vlgmr.msra.gmra.mrb[4].mxu0 %v211_v42  ;;  %1120 = vmatmul.mubr.bf16.vlgmr.msra.gmra.mrb[4].mxu1 %v211_v42  ;;  %v1553_v42 = vld [vmem:[#allocation7 + $0x3c0] ss:$16 sps:$4 sm:$0xff]  }
 0x11c   :  { %1047 = vmatpush1.bf16.msra.mxu0 %v1469_v39  ;;  %1129 = vmatpush1.bf16.msra.mxu1 %v1472_v40  ;;  %v80_v39 = vrot.slane %v1746_v19, %v79_v34  ;;  %v1555_v40 = vld [vmem:[#allocation7 + $0x3c4] ss:$16 sps:$4 sm:$0xff]  }
 0x11d   :  { %1048 = vmatprep.subr.bf16.mxu0 %v1477_v43  ;;  %1130 = vmatprep.subr.bf16.mxu1 %v1480_v44  ;;  %v1556_v43 = vld [vmem:[#allocation7 + $0x3c8] ss:$16 sps:$4 sm:$0xff]  }
 0x11e   :  { %1078 = vmatprep.mubr.bf16.mxu0 %v214_v45  ;;  %1160 = vmatprep.mubr.bf16.mxu1 %v214_v45  ;;  %v201_v44 = vadd.f32 %v1759_v30, %v80_v39  ;;  %v1561_v45 = vld [vmem:[#allocation7 + $0x3e4] ss:$16 sps:$4 sm:$0xff]   ;;  %v343_v30 = vld [vmem:[%s1790_s4] sm:$0xf]  ;;  %s1667_s4 = smov [#allocation8]  }
 0x11f   :  { %s1202_s6 = sshll.u32 %s1667_s4, 4  ;;  %s1203_s6 = int_to_ptr.vmem [resolvable:$true] %s1202_s6 }
 0x120   :  { %1049 = vmatpush1.bf16.msra.mxu0 %v1475_v46  ;;  %1131 = vmatpush1.bf16.msra.mxu1 %v1478_v47  ;;  %v1564_v46 = vld [vmem:[#allocation7 + $0x3ec] ss:$16 sps:$4 sm:$0xff]   ;;  %v1559_v47 = vld [vmem:[#allocation7 + $0x3e0] ss:$16 sps:$4 sm:$0xff]   ;;  %s1631_s7 = scalar_lea.vmem %s1203_s6, 128  ;;  %p1636_p11 = scmp.lt.s32.totalorder %s1203_s6, %s1203_s6 }
 0x121   :  { %1050 = vmatprep.subr.bf16.mxu0 %v1483_v48  ;;  %1132 = vmatprep.subr.bf16.mxu1 %v1486_v49  ;;  %v1562_v48 = vld [vmem:[#allocation7 + $0x3e8] ss:$16 sps:$4 sm:$0xff]   ;;  %v209_v49 = vmax.f32 %v201_v44, 0.0  ;;  %p1632_p10 = scmp.ne.s32.totalorder %s1203_s6, %s1631_s7  ;;  %p1637_p12 = scmp.lt.s32.totalorder %s1631_s7, %s1631_s7 }
 0x123   :  { %v213_v19 = vpack.c.bf16 %v209_v49, %v209_v49  ;;  %p1638_p13 = por %p1637_p12, %p1636_p11 }
 0x124   :  { %1051 = vmatpush1.bf16.msra.mxu0 %v1481_v50  ;;  %1133 = vmatpush1.bf16.msra.mxu1 %v1484_v51  ;;  %v1666_v50 = vmov 1983009808  }
 0x125   :  { %1052 = vmatprep.subr.bf16.mxu0 %v1489_v52  ;;  %1134 = vmatprep.subr.bf16.mxu1 %v1492_v53  ;;  %v1180_v51 = vunpack.c.l.s4 %v1666_v50  ;;  %v348_v52 = vrot.slane %v343_v30, %v71_v18  ;;  %v356_v53 = vrot.slane %v343_v30, %v79_v34  ;;  %p1639_p0 = pnand %p1638_p13, %p1632_p10 }
 0x128   :  { %1053 = vmatpush1.bf16.msra.mxu0 %v1487_v54  ;;  %1135 = vmatpush1.bf16.msra.mxu1 %v1490_v55  ;;  %v352_v54 = vrot.slane %v343_v30, %v75_v20  ;;  %v360_v55 = vrot.slane %v343_v30, %v83_v21 }
 0x129   :  { %1054 = vmatprep.subr.bf16.mxu0 %v1495_v56  ;;  %1136 = vmatprep.subr.bf16.mxu1 %v1498_v57 }
 0x12c   :  { %1055 = vmatpush1.bf16.msra.mxu0 %v1493_v58  ;;  %1137 = vmatpush1.bf16.msra.mxu1 %v1496_v59  ;;  %v1181_v58 = vunpack.c.0.s8 %v1180_v51 }
 0x12d   :  { %1056 = vmatprep.subr.bf16.mxu0 %v1501_v60  ;;  %1138 = vmatprep.subr.bf16.mxu1 %v1504_v61 }
 0x12e   :  { %v1184_v20 = vsub.s32 %v1181_v58, %v1740_v17 }
 0x130   :  { %1057 = vmatpush1.bf16.msra.mxu0 %v1499_v62  ;;  %1139 = vmatpush1.bf16.msra.mxu1 %v1502_v63 }
 0x131   :  { %1058 = vmatprep.subr.bf16.mxu0 %v1507_v0  ;;  %1140 = vmatprep.subr.bf16.mxu1 %v1510_v1 }
 0x134   :  { %1059 = vmatpush1.bf16.msra.mxu0 %v1505_v2  ;;  %1141 = vmatpush1.bf16.msra.mxu1 %v1508_v3 }
 0x135   :  { %1060 = vmatprep.subr.bf16.mxu0 %v1513_v4  ;;  %1142 = vmatprep.subr.bf16.mxu1 %v1516_v5 }
 0x138   :  { %1061 = vmatpush1.bf16.msra.mxu0 %v1511_v6  ;;  %1143 = vmatpush1.bf16.msra.mxu1 %v1514_v7 }
 0x139   :  { %1062 = vmatprep.subr.bf16.mxu0 %v1519_v8  ;;  %1144 = vmatprep.subr.bf16.mxu1 %v1522_v9 }
 0x13c   :  { %1063 = vmatpush1.bf16.msra.mxu0 %v1517_v10  ;;  %1145 = vmatpush1.bf16.msra.mxu1 %v1520_v11 }
 0x13d   :  { %1064 = vmatprep.subr.bf16.mxu0 %v1525_v12  ;;  %1146 = vmatprep.subr.bf16.mxu1 %v1528_v13 }
 0x140   :  { %1065 = vmatpush1.bf16.msra.mxu0 %v1523_v14  ;;  %1147 = vmatpush1.bf16.msra.mxu1 %v1526_v15 }
 0x141   :  { %1066 = vmatprep.subr.bf16.mxu0 %v1531_v16  ;;  %1148 = vmatprep.subr.bf16.mxu1 %v1534_v22 }
 0x144   :  { %1067 = vmatpush1.bf16.msra.mxu0 %v1529_v23  ;;  %1149 = vmatpush1.bf16.msra.mxu1 %v1532_v24 }
 0x145   :  { %1068 = vmatprep.subr.bf16.mxu0 %v1537_v25  ;;  %1150 = vmatprep.subr.bf16.mxu1 %v1540_v26 }
 0x148   :  { %1069 = vmatpush1.bf16.msra.mxu0 %v1535_v27  ;;  %1151 = vmatpush1.bf16.msra.mxu1 %v1538_v28 }
 0x149   :  { %1070 = vmatprep.subr.bf16.mxu0 %v1543_v29  ;;  %1152 = vmatprep.subr.bf16.mxu1 %v1546_v31 }
 0x14c   :  { %1071 = vmatpush1.bf16.msra.mxu0 %v1541_v32  ;;  %1153 = vmatpush1.bf16.msra.mxu1 %v1544_v33 }
 0x14d   :  { %1072 = vmatprep.subr.bf16.mxu0 %v1549_v35  ;;  %1154 = vmatprep.subr.bf16.mxu1 %v1552_v36 }
 0x150   :  { %1073 = vmatpush1.bf16.msra.mxu0 %v1547_v37  ;;  %1155 = vmatpush1.bf16.msra.mxu1 %v1550_v38 }
 0x151   :  { %1074 = vmatprep.subr.bf16.mxu0 %v1555_v40  ;;  %1156 = vmatprep.subr.bf16.mxu1 %v1558_v41 }
 0x154   :  { %1075 = vmatpush1.bf16.msra.mxu0 %v1553_v42  ;;  %1157 = vmatpush1.bf16.msra.mxu1 %v1556_v43 }
 0x155   :  { %1076 = vmatprep.subr.bf16.mxu0 %v1561_v45  ;;  %1158 = vmatprep.subr.bf16.mxu1 %v1564_v46 }
 0x158   :  { %1077 = vmatpush1.bf16.msra.mxu0 %v1559_v47  ;;  %1159 = vmatpush1.bf16.msra.mxu1 %v1562_v48 }
 0x15b   :  { %1079 = vmatmul.mubr.bf16.vlgmr.msra.gmra.mrb[4].mxu0 %v213_v19  ;;  %1161 = vmatmul.mubr.bf16.vlgmr.msra.gmra.mrb[4].mxu1 %v213_v19 }
 0x22e   :  { %v1080_v56 = vpop.f32.mrb[4].mxu0  ;;  %v1162_v57 = vpop.f32.mrb[4].mxu1 }
 0x22f   :  { %v1346_v59 = vadd.f32 %v1080_v56, %v348_v52  ;;  %v1348_v60 = vadd.f32 %v1162_v57, %v356_v53  ;;  %v1082_v61 = vpop.f32.mrb[5].mxu0  ;;  %v1164_v62 = vpop.f32.mrb[5].mxu1 }
 0x230   :  { %v1347_v63 = vadd.f32 %v1082_v61, %v352_v54  ;;  %v1349_v0 = vadd.f32 %v1164_v62, %v360_v55  ;;  %v1084_v1 = vpop.f32.mrb[6].mxu0  ;;  %v1166_v2 = vpop.f32.mrb[6].mxu1 }
 0x231   :  { %v1169_v3 = vmax.f32 %v1346_v59, 0.0  ;;  %v1171_v18 = vmax.f32 %v1348_v60, 0.0  ;;  %v1085_v4 = vpop.f32.mrb[7].mxu0  ;;  %v1167_v5 = vpop.f32.mrb[7].mxu1 }
 0x232   :  { %v1170_v6 = vmax.f32 %v1347_v63, 0.0  ;;  %v1172_v7 = vmax.f32 %v1349_v0, 0.0 }
 0x234   :  { %v1177_v21 = vcombine.low %v1169_v3, %v1170_v6  ;;  %v1178_v8 = vcombine.low %v1171_v18, %v1172_v7 }
 0x236   :  { %v1185_v9 = vrot.slane %v1177_v21, %v1184_v20  ;;  %v1192_v10 = vrot.slane %v1178_v8, %v1184_v20 }
 0x238   :  { %v1193_v11 = vcombine.low %v1185_v9, %v1192_v10 }
 0x23a   :  { %1195 = vst [vmem:[#allocation8] sm:$0xff] %v1193_v11 }
 0x23b   :  { %1642 = shalt.err (!%p1639_p0)
}
 0x23c   :  { %s1643_s10 = scalar_lea.hbm %s1791_s5, 128 }
 0x23d   :  { %p1644_p1 = scmp.ne.s32.totalorder %s1791_s5, %s1643_s10  ;;  %p1647_p2 = scmp.lt.u32.totalorder %s1643_s10, %s1791_s5 }
 0x23f   :  { %p1649_p3 = pnand %p1647_p2, %p1644_p1 }
 0x241   :  { %1652 = shalt.err (!%p1649_p3)
}
 0x242   :  { %1205 = dma.vmem_to_hbm [thread:$0]  %s1203_s6, 128, %s1791_s5, [#allocation4]  }
 0x243   :  { %1657 = dma.done.wait [#allocation4], 128  }
 0x244   :  { %1658 = vsyncadd [#allocation4], 4294967168 }
 0x245   :  { %1209 = vsyncpa [#allocation3], 1 }
 0x246   :  { %1210 = vsyncpa [#allocation6], 1 }
 0x247   :  { %1211 = vsyncpa [#allocation4], 1 }

</bundles_post_ra>
